<compile_context>
chip_gen: v6e
topology: v6e:2x2x1
jax: 0.10.0
libtpu: 0.0.40
codegen_flags: <defaults>
</compile_context>

<pallas_src>
import functools
import math

import jax
import jax.numpy as jnp
from jax import lax
from jax.experimental import pallas as pl
from jax.experimental.pallas import tpu as pltpu


# ---------------------------------------------------------------------------
# Hardware-aware tiling policy
# ---------------------------------------------------------------------------
_SMALL_PROBLEM_BYTES = 128 * 1024   # below this, fused XLA LN beats a launch


@functools.lru_cache(maxsize=None)
def _hw():
    """Returns (num_tensorcores_per_chip, physical_vmem_bytes) — best effort."""
    vmem = 64 * 1024 * 1024           # conservative default (v7x)
    try:
        info = pltpu.get_tpu_info()
        vmem = int(getattr(info, "vmem_capacity_bytes", vmem)) or vmem
    except Exception:
        pass
    kind = ""
    try:
        kind = jax.devices()[0].device_kind.lower()
    except Exception:
        pass
    num_cores = 2 if "v7" in kind else 1   # v5e/v6e: 1 TC per chip
    return num_cores, vmem


def _vmem_limit_bytes():
    _, vmem = _hw()
    return min(vmem // 2, 64 * 1024 * 1024)


def _vmem_buffer_budget():
    return _vmem_limit_bytes() // 2


def _max_row_tile():
    _, vmem = _hw()
    return 2048 if vmem >= 100 * 1024 * 1024 else 1024


def _cdiv(a, b):
    return (a + b - 1) // b


def _round_up(v, m):
    return _cdiv(v, m) * m


def _sublane(dtype):
    size = jnp.dtype(dtype).itemsize
    if size >= 4:
        return 8
    if size == 2:
        return 16
    return 32


def _bytes_per_row(feature_dims, dtypes):
    # per stream per row: (input + output) x double-buffer + ~3 block-sized f32
    # temporaries materialized inside _ln_rows.
    return sum(4 * d * jnp.dtype(dt).itemsize + 3 * d * 4
               for d, dt in zip(feature_dims, dtypes))


def _pick_row_tile(n_rows, feature_dims, dtypes):
    """Largest sublane-aligned row tile that fits the VMEM buffer budget."""
    sub = max(_sublane(dt) for dt in dtypes)
    bpr = _bytes_per_row(feature_dims, dtypes)
    budget = _vmem_buffer_budget()
    vmem_rows = max(sub, (budget // max(bpr, 1)) // sub * sub)
    row_tile = min(vmem_rows, _max_row_tile())
    num_cores, _ = _hw()
    # Single-TC chips (v5e/v6e): the grid is a sequential loop — no reason to
    # force many steps.  Multi-TC (v7x): keep >= 2 steps per core for sharding.
    min_steps = 2 * num_cores if num_cores > 1 else 1
    row_tile = min(row_tile, max(sub, _round_up(_cdiv(n_rows, min_steps), sub)))
    return max(sub, row_tile)


def _lane_dense(d):
    return d >= 128 and d % 128 == 0


# ---------------------------------------------------------------------------
# Kernels
# ---------------------------------------------------------------------------
def _ln_rows(x, gamma, beta, eps):
    """Row-wise LayerNorm in f32 (matches torch.nn.LayerNorm math)."""
    xf = x.astype(jnp.float32)
    mean = jnp.mean(xf, axis=-1, keepdims=True)
    centered = xf - mean
    var = jnp.mean(centered * centered, axis=-1, keepdims=True)
    # fold gamma into the per-row scale: one fewer full-block VPU pass
    scale = lax.rsqrt(var + eps) * gamma.astype(jnp.float32)
    return centered * scale + beta.astype(jnp.float32)


def _layernorm_kernel(x_ref, g_ref, b_ref, o_ref, *, eps):
    o_ref[...] = _ln_rows(x_ref[...], g_ref[...], b_ref[...], eps).astype(o_ref.dtype)


def _dual_layernorm_kernel(x_ref, gx_ref, bx_ref, c_ref, gc_ref, bc_ref,
                           ox_ref, oc_ref, *, eps):
    ox_ref[...] = _ln_rows(x_ref[...], gx_ref[...], bx_ref[...], eps).astype(ox_ref.dtype)
    oc_ref[...] = _ln_rows(c_ref[...], gc_ref[...], bc_ref[...], eps).astype(oc_ref.dtype)


def _fused_prenorm_linear_kernel(x_ref, gx_ref, bx_ref, wx_ref,
                                 c_ref, gc_ref, bc_ref, wc_ref,
                                 o_ref, xn_ref, cn_ref, *, eps):
    # LayerNorm is over the full feature axis == the matmul K axis, so each
    # row tile is normalized exactly once (at the first output-column step)
    # and the normalized activations never leave VMEM.
    @pl.when(pl.program_id(1) == 0)
    def _():
        xn_ref[...] = _ln_rows(x_ref[...], gx_ref[...], bx_ref[...], eps).astype(xn_ref.dtype)
        cn_ref[...] = _ln_rows(c_ref[...], gc_ref[...], bc_ref[...], eps).astype(cn_ref.dtype)

    acc = jnp.dot(xn_ref[...], wx_ref[...], preferred_element_type=jnp.float32)
    acc = acc + jnp.dot(cn_ref[...], wc_ref[...], preferred_element_type=jnp.float32)
    o_ref[...] = acc.astype(o_ref.dtype)


# ---------------------------------------------------------------------------
# Wrappers
# ---------------------------------------------------------------------------
def pallas_layernorm(x, gamma, beta, *, eps=1e-5, row_tile=None):
    """LayerNorm over the last dim of x (any leading dims), via Pallas."""
    D = x.shape[-1]
    itemsize = jnp.dtype(x.dtype).itemsize
    total_bytes = x.size * itemsize
    min_block_bytes = 8 * _bytes_per_row((D,), (x.dtype,))
    if (not _lane_dense(D) or total_bytes < _SMALL_PROBLEM_BYTES
            or min_block_bytes > _vmem_buffer_budget()):
        # Lane-sparse, tiny, or too-wide-D cases: fused XLA wins / is required.
        # TODO(synk): very large D would need an in-kernel D-split (two-pass
        # mean/var) path instead of this XLA fallback.
        return _ln_rows(x, gamma, beta, eps).astype(x.dtype)

    x2d = x.reshape(-1, D)
    R = x2d.shape[0]
    if row_tile is None:
        row_tile = _pick_row_tile(R, (D,), (x.dtype,))
    grid = _cdiv(R, row_tile)   # partial last block handled by Pallas masking

    out = pl.pallas_call(
        functools.partial(_layernorm_kernel, eps=eps),
        out_shape=jax.ShapeDtypeStruct((R, D), x.dtype),
        grid_spec=pltpu.PrefetchScalarGridSpec(
            num_scalar_prefetch=0,
            grid=(grid,),
            in_specs=[
                pl.BlockSpec((row_tile, D), lambda i: (i, 0)),
                pl.BlockSpec((1, D), lambda i: (0, 0)),   # gamma: VMEM-resident
                pl.BlockSpec((1, D), lambda i: (0, 0)),   # beta:  VMEM-resident
            ],
            out_specs=pl.BlockSpec((row_tile, D), lambda i: (i, 0)),
        ),
        compiler_params=pltpu.CompilerParams(
            dimension_semantics=("parallel",),
            vmem_limit_bytes=_vmem_limit_bytes()),
    )(x2d, gamma.reshape(1, D), beta.reshape(1, D))
    return out.reshape(x.shape)


def pallas_dual_layernorm(x, gx, bx, c, gc, bc, *, eps=1e-5, row_tile=None):
    """Fused LayerNorm of x and context in one pallas_call (shared row grid)."""
    D = x.shape[-1]
    CD = c.shape[-1]
    x2d = x.reshape(-1, D)
    c2d = c.reshape(-1, CD)
    R = x2d.shape[0]
    assert c2d.shape[0] == R, "dual LN requires matching row counts"

    total_bytes = (x.size * jnp.dtype(x.dtype).itemsize
                   + c.size * jnp.dtype(c.dtype).itemsize)
    min_block_bytes = 8 * _bytes_per_row((D, CD), (x.dtype, c.dtype))
    if (not _lane_dense(D) or not _lane_dense(CD)
            or total_bytes < _SMALL_PROBLEM_BYTES
            or min_block_bytes > _vmem_buffer_budget()):
        return (_ln_rows(x, gx, bx, eps).astype(x.dtype),
                _ln_rows(c, gc, bc, eps).astype(c.dtype))

    if row_tile is None:
        row_tile = _pick_row_tile(R, (D, CD), (x.dtype, c.dtype))
    grid = _cdiv(R, row_tile)

    xo, co = pl.pallas_call(
        functools.partial(_dual_layernorm_kernel, eps=eps),
        out_shape=(jax.ShapeDtypeStruct((R, D), x.dtype),
                   jax.ShapeDtypeStruct((R, CD), c.dtype)),
        grid_spec=pltpu.PrefetchScalarGridSpec(
            num_scalar_prefetch=0,
            grid=(grid,),
            in_specs=[
                pl.BlockSpec((row_tile, D), lambda i: (i, 0)),
                pl.BlockSpec((1, D), lambda i: (0, 0)),
                pl.BlockSpec((1, D), lambda i: (0, 0)),
                pl.BlockSpec((row_tile, CD), lambda i: (i, 0)),
                pl.BlockSpec((1, CD), lambda i: (0, 0)),
                pl.BlockSpec((1, CD), lambda i: (0, 0)),
            ],
            out_specs=[
                pl.BlockSpec((row_tile, D), lambda i: (i, 0)),
                pl.BlockSpec((row_tile, CD), lambda i: (i, 0)),
            ],
        ),
        compiler_params=pltpu.CompilerParams(
            dimension_semantics=("parallel",),
            vmem_limit_bytes=_vmem_limit_bytes()),
    )(x2d, gx.reshape(1, D), bx.reshape(1, D),
      c2d, gc.reshape(1, CD), bc.reshape(1, CD))
    return xo.reshape(x.shape), co.reshape(c.shape)


def pallas_prenorm_linear_mix(x, gx, bx, wx, c, gc, bc, wc, *, eps=1e-5,
                              row_tile=None, col_tile=None):
    """Fused:  out = LayerNorm(x) @ wx + LayerNorm(context) @ wc.

    LayerNorm is done in-kernel on the freshly DMA'd row tiles (K axis == the
    normalized feature axis, held whole in VMEM), so normalized activations
    never round-trip through HBM.
    """
    D = x.shape[-1]
    CD = c.shape[-1]
    N = wx.shape[-1]
    x2d = x.reshape(-1, D)
    c2d = c.reshape(-1, CD)
    M = x2d.shape[0]
    assert c2d.shape[0] == M

    sub = max(_sublane(x.dtype), _sublane(c.dtype))
    if row_tile is None:
        row_tile = min(256, _round_up(M, sub))
    if col_tile is None:
        col_tile = min(512, N) if N % 128 == 0 else N
    grid = (_cdiv(M, row_tile), _cdiv(N, col_tile))

    out = pl.pallas_call(
        functools.partial(_fused_prenorm_linear_kernel, eps=eps),
        out_shape=jax.ShapeDtypeStruct((M, N), x.dtype),
        grid_spec=pltpu.PrefetchScalarGridSpec(
            num_scalar_prefetch=0,
            grid=grid,
            in_specs=[
                pl.BlockSpec((row_tile, D), lambda i, j: (i, 0)),
                pl.BlockSpec((1, D), lambda i, j: (0, 0)),
                pl.BlockSpec((1, D), lambda i, j: (0, 0)),
                pl.BlockSpec((D, col_tile), lambda i, j: (0, j)),
                pl.BlockSpec((row_tile, CD), lambda i, j: (i, 0)),
                pl.BlockSpec((1, CD), lambda i, j: (0, 0)),
                pl.BlockSpec((1, CD), lambda i, j: (0, 0)),
                pl.BlockSpec((CD, col_tile), lambda i, j: (0, j)),
            ],
            out_specs=pl.BlockSpec((row_tile, col_tile), lambda i, j: (i, j)),
            scratch_shapes=[pltpu.VMEM((row_tile, D), x.dtype),
                            pltpu.VMEM((row_tile, CD), c.dtype)],
        ),
        compiler_params=pltpu.CompilerParams(
            dimension_semantics=("parallel", "arbitrary"),
            vmem_limit_bytes=_vmem_limit_bytes()),
    )(x2d, gx.reshape(1, D), bx.reshape(1, D), wx,
      c2d, gc.reshape(1, CD), bc.reshape(1, CD), wc)
    return out.reshape(x.shape[:-1] + (N,))


# ---------------------------------------------------------------------------
# PreNorm module (parameters created deterministically in-script)
# ---------------------------------------------------------------------------
class LinearMix:
    """Demo wrapped fn: out = x @ wx + context @ wc (recognized for fusion)."""

    def __init__(self, wx, wc):
        self.wx = wx
        self.wc = wc

    def __call__(self, x, context=None):
        return (jnp.dot(x, self.wx, precision=lax.Precision.HIGHEST)
                + jnp.dot(context, self.wc, precision=lax.Precision.HIGHEST))


class PreNorm:
    """JAX/Pallas port of the PyTorch PreNorm wrapper."""

    def __init__(self, dim, fn, context_dim=None, eps=1e-5):
        self.fn = fn
        self.eps = eps
        # nn.LayerNorm default init: weight=1, bias=0 (deterministic).
        self.norm_gamma = jnp.ones((dim,), jnp.float32)
        self.norm_beta = jnp.zeros((dim,), jnp.float32)
        if context_dim is not None:
            self.ctx_gamma = jnp.ones((context_dim,), jnp.float32)
            self.ctx_beta = jnp.zeros((context_dim,), jnp.float32)
        else:
            self.ctx_gamma = None
            self.ctx_beta = None

    def _can_fuse_linear_mix(self, x, context):
        if self.ctx_gamma is None or not isinstance(self.fn, LinearMix):
            return False
        D, CD = x.shape[-1], context.shape[-1]
        wx, wc = self.fn.wx, self.fn.wc
        if wx.ndim != 2 or wc.ndim != 2 or wx.shape[0] != D or wc.shape[0] != CD:
            return False
        N = wx.shape[-1]
        if wc.shape[-1] != N:
            return False
        if not (_lane_dense(D) and _lane_dense(CD) and _lane_dense(N)):
            return False
        if math.prod(x.shape[:-1]) != math.prod(context.shape[:-1]):
            return False
        # rough VMEM guard for full-K row tiles + weight column blocks
        itl = jnp.dtype(x.dtype).itemsize
        tn = min(512, N)
        est = (256 * (D + CD) * (3 * itl + 4)          # x/ctx blocks + scratch
               + 2 * (D + CD) * tn * itl               # weight column blocks
               + 2 * 256 * tn * itl)                   # output blocks
        return est < _vmem_limit_bytes()

    def __call__(self, x, **kwargs):
        if self.ctx_gamma is not None:
            context = kwargs["context"]   # KeyError if missing, like the spec
            if self._can_fuse_linear_mix(x, context):
                # Fused path: LayerNorms are a prologue of the matmul kernel;
                # normalized activations never hit HBM.
                return pallas_prenorm_linear_mix(
                    x, self.norm_gamma, self.norm_beta, self.fn.wx,
                    context, self.ctx_gamma, self.ctx_beta, self.fn.wc,
                    eps=self.eps)

            # TODO(synk): `self.fn` is an arbitrary external module; only the
            # LinearMix form above is fused.  Everything else pays one HBM
            # round-trip of the normalized activations.
            same_rows = (math.prod(x.shape[:-1]) == math.prod(context.shape[:-1]))
            if same_rows:
                x_normed, ctx_normed = pallas_dual_layernorm(
                    x, self.norm_gamma, self.norm_beta,
                    context, self.ctx_gamma, self.ctx_beta, eps=self.eps)
            else:
                x_normed = pallas_layernorm(x, self.norm_gamma, self.norm_beta,
                                            eps=self.eps)
                ctx_normed = pallas_layernorm(context, self.ctx_gamma,
                                              self.ctx_beta, eps=self.eps)
            kwargs = dict(kwargs)
            kwargs.update(context=ctx_normed)
            return self.fn(x_normed, **kwargs)

        x_normed = pallas_layernorm(x, self.norm_gamma, self.norm_beta,
                                    eps=self.eps)
        return self.fn(x_normed, **kwargs)


if __name__ == "__main__":
    # small, lane-dense shapes: batch=2, seq=8, dim=128, context dim=256
    B, S, D, CD = 2, 8, 128, 256
    key = jax.random.PRNGKey(0)
    kx, kc, kw1, kw2, kx2, kg, kb, kx3, kc3 = jax.random.split(key, 9)

    x = jax.random.normal(kx, (B, S, D), jnp.float32)
    context = jax.random.normal(kc, (B, S, CD), jnp.float32)

    Wx = jax.random.normal(kw1, (D, D), jnp.float32) * 0.02
    Wc = jax.random.normal(kw2, (CD, D), jnp.float32) * 0.02
    fn = LinearMix(Wx, Wc)

    prenorm = PreNorm(D, fn, context_dim=CD)
    out = jax.block_until_ready(prenorm(x, context=context))   # fused Pallas path

    def ln_ref(v, g, b, eps=1e-5):
        m = jnp.mean(v, axis=-1, keepdims=True)
        va = jnp.mean((v - m) ** 2, axis=-1, keepdims=True)
        return (v - m) * lax.rsqrt(va + eps) * g + b

    ref = fn(ln_ref(x, 1.0, 0.0), context=ln_ref(context, 1.0, 0.0))
    assert out.shape == (B, S, D)
    assert jnp.allclose(out, ref, atol=2e-3, rtol=2e-3)

    # standalone LN kernel: non-trivial gamma/beta, multi-step grid with a
    # partial (masked) last block.
    R2, D2 = 523, 256
    x2 = jax.random.normal(kx2, (R2, D2), jnp.float32)
    g2 = 1.0 + 0.5 * jax.random.normal(kg, (D2,), jnp.float32)
    b2 = 0.1 * jax.random.normal(kb, (D2,), jnp.float32)
    out2 = jax.block_until_ready(pallas_layernorm(x2, g2, b2, row_tile=128))
    assert jnp.allclose(out2, ln_ref(x2, g2, b2), atol=1e-4, rtol=1e-4)

    # fused dual-stream LN kernel (used by PreNorm when fn is not fusable).
    x3 = jax.random.normal(kx3, (4, 64, D), jnp.float32)
    c3 = jax.random.normal(kc3, (4, 64, CD), jnp.float32)
    gx3, bx3 = jnp.ones((D,), jnp.float32), jnp.zeros((D,), jnp.float32)
    gc3, bc3 = jnp.ones((CD,), jnp.float32), jnp.zeros((CD,), jnp.float32)
    x3n, c3n = pallas_dual_layernorm(x3, gx3, bx3, c3, gc3, bc3)
    jax.block_until_ready((x3n, c3n))
    assert jnp.allclose(x3n, ln_ref(x3, 1.0, 0.0), atol=1e-4, rtol=1e-4)
    assert jnp.allclose(c3n, ln_ref(c3, 1.0, 0.0), atol=1e-4, rtol=1e-4)

    print("KERNEL_OK")
</pallas_src>

<mosaic_0001>
module attributes {stable_mosaic.version = 11 : i64} {
  func.func @_fused_prenorm_linear_kernel(%arg0: i32, %arg1: i32, %arg2: memref<16x128xf32, #tpu.memory_space<vmem>>, %arg3: memref<1x128xf32, #tpu.memory_space<vmem>>, %arg4: memref<1x128xf32, #tpu.memory_space<vmem>>, %arg5: memref<128x128xf32, #tpu.memory_space<vmem>>, %arg6: memref<16x256xf32, #tpu.memory_space<vmem>>, %arg7: memref<1x256xf32, #tpu.memory_space<vmem>>, %arg8: memref<1x256xf32, #tpu.memory_space<vmem>>, %arg9: memref<256x128xf32, #tpu.memory_space<vmem>>, %arg10: memref<16x128xf32, #tpu.memory_space<vmem>>, %arg11: memref<16x128xf32, #tpu.memory_space<vmem>>, %arg12: memref<16x256xf32, #tpu.memory_space<vmem>>) attributes {dimension_semantics = [#tpu.dimension_semantics<parallel>, #tpu.dimension_semantics<arbitrary>], iteration_bounds = array<i64: 1, 1>, scalar_prefetch = 0 : i64, scratch_operands = 2 : i64, tpu.core_type = #tpu.core_type<tc>, window_params = [{transform_indices = @transform_0, window_bounds = array<i64: 16, 128>}, {pipeline_mode = #tpu.pipeline_mode<synchronous>, transform_indices = @transform_1, window_bounds = array<i64: 1, 128>}, {pipeline_mode = #tpu.pipeline_mode<synchronous>, transform_indices = @transform_2, window_bounds = array<i64: 1, 128>}, {transform_indices = @transform_3, window_bounds = array<i64: 128, 128>}, {transform_indices = @transform_4, window_bounds = array<i64: 16, 256>}, {pipeline_mode = #tpu.pipeline_mode<synchronous>, transform_indices = @transform_5, window_bounds = array<i64: 1, 256>}, {pipeline_mode = #tpu.pipeline_mode<synchronous>, transform_indices = @transform_6, window_bounds = array<i64: 1, 256>}, {transform_indices = @transform_7, window_bounds = array<i64: 256, 128>}, {transform_indices = @transform_8, window_bounds = array<i64: 16, 128>}]} {
    %c0_i32 = arith.constant 0 : i32
    %0 = arith.cmpi eq, %arg1, %c0_i32 : i32
    %1 = arith.extui %0 : i1 to i32
    %c0_i32_0 = arith.constant 0 : i32
    %2 = arith.cmpi ne, %1, %c0_i32_0 : i32
    scf.if %2 {
      %c0_11 = arith.constant 0 : index
      %c0_12 = arith.constant 0 : index
      %11 = vector.load %arg2[%c0_11, %c0_12] : memref<16x128xf32, #tpu.memory_space<vmem>>, vector<16x128xf32>
      %c0_13 = arith.constant 0 : index
      %c0_14 = arith.constant 0 : index
      %12 = vector.load %arg3[%c0_13, %c0_14] : memref<1x128xf32, #tpu.memory_space<vmem>>, vector<1x128xf32>
      %c0_15 = arith.constant 0 : index
      %c0_16 = arith.constant 0 : index
      %13 = vector.load %arg4[%c0_15, %c0_16] : memref<1x128xf32, #tpu.memory_space<vmem>>, vector<1x128xf32>
      %cst_17 = arith.constant dense<0.000000e+00> : vector<16xf32>
      %14 = vector.multi_reduction <add>, %11, %cst_17 [1] : vector<16x128xf32> to vector<16xf32>
      %15 = vector.shape_cast %14 : vector<16xf32> to vector<16x1xf32>
      %cst_18 = arith.constant 1.280000e+02 : f32
      %16 = vector.broadcast %cst_18 : f32 to vector<16x1xf32>
      %17 = arith.divf %15, %16 : vector<16x1xf32>
      %18 = vector.broadcast %17 : vector<16x1xf32> to vector<16x128xf32>
      %19 = arith.subf %11, %18 : vector<16x128xf32>
      %20 = arith.mulf %19, %19 : vector<16x128xf32>
      %cst_19 = arith.constant dense<0.000000e+00> : vector<16xf32>
      %21 = vector.multi_reduction <add>, %20, %cst_19 [1] : vector<16x128xf32> to vector<16xf32>
      %22 = vector.shape_cast %21 : vector<16xf32> to vector<16x1xf32>
      %cst_20 = arith.constant 1.280000e+02 : f32
      %23 = vector.broadcast %cst_20 : f32 to vector<16x1xf32>
      %24 = arith.divf %22, %23 : vector<16x1xf32>
      %cst_21 = arith.constant 9.99999974E-6 : f32
      %25 = vector.broadcast %cst_21 : f32 to vector<16x1xf32>
      %26 = arith.addf %24, %25 : vector<16x1xf32>
      %27 = math.rsqrt %26 : vector<16x1xf32>
      %28 = vector.broadcast %27 : vector<16x1xf32> to vector<16x128xf32>
      %29 = vector.broadcast %12 : vector<1x128xf32> to vector<16x128xf32>
      %30 = arith.mulf %28, %29 : vector<16x128xf32>
      %31 = arith.mulf %19, %30 : vector<16x128xf32>
      %32 = vector.broadcast %13 : vector<1x128xf32> to vector<16x128xf32>
      %33 = arith.addf %31, %32 : vector<16x128xf32>
      %c0_22 = arith.constant 0 : index
      %c0_23 = arith.constant 0 : index
      %34 = vector.load %arg11[%c0_22, %c0_23] : memref<16x128xf32, #tpu.memory_space<vmem>>, vector<16x128xf32>
      tpu.vector_store %arg11[%c0_22, %c0_23], %33 {strides = array<i32>} : memref<16x128xf32, #tpu.memory_space<vmem>>, vector<16x128xf32>,
      %c0_24 = arith.constant 0 : index
      %c0_25 = arith.constant 0 : index
      %35 = vector.load %arg6[%c0_24, %c0_25] : memref<16x256xf32, #tpu.memory_space<vmem>>, vector<16x256xf32>
      %c0_26 = arith.constant 0 : index
      %c0_27 = arith.constant 0 : index
      %36 = vector.load %arg7[%c0_26, %c0_27] : memref<1x256xf32, #tpu.memory_space<vmem>>, vector<1x256xf32>
      %c0_28 = arith.constant 0 : index
      %c0_29 = arith.constant 0 : index
      %37 = vector.load %arg8[%c0_28, %c0_29] : memref<1x256xf32, #tpu.memory_space<vmem>>, vector<1x256xf32>
      %cst_30 = arith.constant dense<0.000000e+00> : vector<16xf32>
      %38 = vector.multi_reduction <add>, %35, %cst_30 [1] : vector<16x256xf32> to vector<16xf32>
      %39 = vector.shape_cast %38 : vector<16xf32> to vector<16x1xf32>
      %cst_31 = arith.constant 2.560000e+02 : f32
      %40 = vector.broadcast %cst_31 : f32 to vector<16x1xf32>
      %41 = arith.divf %39, %40 : vector<16x1xf32>
      %42 = vector.broadcast %41 : vector<16x1xf32> to vector<16x256xf32>
      %43 = arith.subf %35, %42 : vector<16x256xf32>
      %44 = arith.mulf %43, %43 : vector<16x256xf32>
      %cst_32 = arith.constant dense<0.000000e+00> : vector<16xf32>
      %45 = vector.multi_reduction <add>, %44, %cst_32 [1] : vector<16x256xf32> to vector<16xf32>
      %46 = vector.shape_cast %45 : vector<16xf32> to vector<16x1xf32>
      %cst_33 = arith.constant 2.560000e+02 : f32
      %47 = vector.broadcast %cst_33 : f32 to vector<16x1xf32>
      %48 = arith.divf %46, %47 : vector<16x1xf32>
      %cst_34 = arith.constant 9.99999974E-6 : f32
      %49 = vector.broadcast %cst_34 : f32 to vector<16x1xf32>
      %50 = arith.addf %48, %49 : vector<16x1xf32>
      %51 = math.rsqrt %50 : vector<16x1xf32>
      %52 = vector.broadcast %51 : vector<16x1xf32> to vector<16x256xf32>
      %53 = vector.broadcast %36 : vector<1x256xf32> to vector<16x256xf32>
      %54 = arith.mulf %52, %53 : vector<16x256xf32>
      %55 = arith.mulf %43, %54 : vector<16x256xf32>
      %56 = vector.broadcast %37 : vector<1x256xf32> to vector<16x256xf32>
      %57 = arith.addf %55, %56 : vector<16x256xf32>
      %c0_35 = arith.constant 0 : index
      %c0_36 = arith.constant 0 : index
      %58 = vector.load %arg12[%c0_35, %c0_36] : memref<16x256xf32, #tpu.memory_space<vmem>>, vector<16x256xf32>
      tpu.vector_store %arg12[%c0_35, %c0_36], %57 {strides = array<i32>} : memref<16x256xf32, #tpu.memory_space<vmem>>, vector<16x256xf32>,
    } else {
    }
    %c0 = arith.constant 0 : index
    %c0_1 = arith.constant 0 : index
    %3 = vector.load %arg11[%c0, %c0_1] : memref<16x128xf32, #tpu.memory_space<vmem>>, vector<16x128xf32>
    %c0_2 = arith.constant 0 : index
    %c0_3 = arith.constant 0 : index
    %4 = vector.load %arg5[%c0_2, %c0_3] : memref<128x128xf32, #tpu.memory_space<vmem>>, vector<128x128xf32>
    %cst = arith.constant dense<0.000000e+00> : vector<16x128xf32>
    %5 = tpu.matmul %3, %4, %cst {dimension_numbers = #tpu.dot_dimension_numbers<[1], [0], [0], [1], [0, 0, 1, 1], [], []>} : vector<16x128xf32>, vector<128x128xf32>, vector<16x128xf32> -> vector<16x128xf32>
    %c0_4 = arith.constant 0 : index
    %c0_5 = arith.constant 0 : index
    %6 = vector.load %arg12[%c0_4, %c0_5] : memref<16x256xf32, #tpu.memory_space<vmem>>, vector<16x256xf32>
    %c0_6 = arith.constant 0 : index
    %c0_7 = arith.constant 0 : index
    %7 = vector.load %arg9[%c0_6, %c0_7] : memref<256x128xf32, #tpu.memory_space<vmem>>, vector<256x128xf32>
    %cst_8 = arith.constant dense<0.000000e+00> : vector<16x128xf32>
    %8 = tpu.matmul %6, %7, %cst_8 {dimension_numbers = #tpu.dot_dimension_numbers<[1], [0], [0], [1], [0, 0, 1, 1], [], []>} : vector<16x256xf32>, vector<256x128xf32>, vector<16x128xf32> -> vector<16x128xf32>
    %9 = arith.addf %5, %8 : vector<16x128xf32>
    %c0_9 = arith.constant 0 : index
    %c0_10 = arith.constant 0 : index
    %10 = vector.load %arg10[%c0_9, %c0_10] : memref<16x128xf32, #tpu.memory_space<vmem>>, vector<16x128xf32>
    tpu.vector_store %arg10[%c0_9, %c0_10], %9 {strides = array<i32>} : memref<16x128xf32, #tpu.memory_space<vmem>>, vector<16x128xf32>,
    return
  }
  func.func @transform_0(%arg0: i32, %arg1: i32) -> (i32, i32) {
    %c0_i32 = arith.constant 0 : i32
    %c0_i32_0 = arith.constant 0 : i32
    return %arg0, %c0_i32 : i32, i32
  }
  func.func @transform_1(%arg0: i32, %arg1: i32) -> (i32, i32) {
    %c0_i32 = arith.constant 0 : i32
    %c0_i32_0 = arith.constant 0 : i32
    %c0_i32_1 = arith.constant 0 : i32
    return %c0_i32, %c0_i32_0 : i32, i32
  }
  func.func @transform_2(%arg0: i32, %arg1: i32) -> (i32, i32) {
    %c0_i32 = arith.constant 0 : i32
    %c0_i32_0 = arith.constant 0 : i32
    %c0_i32_1 = arith.constant 0 : i32
    return %c0_i32, %c0_i32_0 : i32, i32
  }
  func.func @transform_3(%arg0: i32, %arg1: i32) -> (i32, i32) {
    %c0_i32 = arith.constant 0 : i32
    %c0_i32_0 = arith.constant 0 : i32
    return %c0_i32, %arg1 : i32, i32
  }
  func.func @transform_4(%arg0: i32, %arg1: i32) -> (i32, i32) {
    %c0_i32 = arith.constant 0 : i32
    %c0_i32_0 = arith.constant 0 : i32
    return %arg0, %c0_i32 : i32, i32
  }
  func.func @transform_5(%arg0: i32, %arg1: i32) -> (i32, i32) {
    %c0_i32 = arith.constant 0 : i32
    %c0_i32_0 = arith.constant 0 : i32
    %c0_i32_1 = arith.constant 0 : i32
    return %c0_i32, %c0_i32_0 : i32, i32
  }
  func.func @transform_6(%arg0: i32, %arg1: i32) -> (i32, i32) {
    %c0_i32 = arith.constant 0 : i32
    %c0_i32_0 = arith.constant 0 : i32
    %c0_i32_1 = arith.constant 0 : i32
    return %c0_i32, %c0_i32_0 : i32, i32
  }
  func.func @transform_7(%arg0: i32, %arg1: i32) -> (i32, i32) {
    %c0_i32 = arith.constant 0 : i32
    %c0_i32_0 = arith.constant 0 : i32
    return %c0_i32, %arg1 : i32, i32
  }
  func.func @transform_8(%arg0: i32, %arg1: i32) -> (i32, i32) {
    %c0_i32 = arith.constant 0 : i32
    return %arg0, %arg1 : i32, i32
  }
}

</mosaic_0001>

<bundles_post_ra>
// kernel: tpu_custom_call.1
= control target key start
LH: loop header
LB: loop body
LE: loop exit
PB: predicated region body
PF: predicated region fallthrough
CT: control target
= control target key end

     0   :  { %13 = vsyncpa [#allocation5], 0  ;;  %s806_s0 = inlined_call_operand.hbm [shape: f32[16,128], index: 0, kind: input, shape index: {}]   ;;  %s807_s1 = inlined_call_operand.vmem [shape: f32[1,128], index: 1, kind: input, shape index: {}]   ;;  %s808_s2 = inlined_call_operand.hbm [shape: f32[1,128], index: 2, kind: input, shape index: {}]   ;;  %s809_s3 = inlined_call_operand.hbm [shape: f32[128,128], index: 3, kind: input, shape index: {}]   ;;  %s810_s4 = inlined_call_operand.hbm [shape: f32[16,256], index: 4, kind: input, shape index: {}]   ;;  %s811_s5 = inlined_call_operand.vmem [shape: f32[1,256], index: 5, kind: input, shape index: {}]   ;;  %s812_s6 = inlined_call_operand.vmem [shape: f32[1,256], index: 6, kind: input, shape index: {}]   ;;  %s813_s7 = inlined_call_operand.hbm [shape: f32[256,128], index: 7, kind: input, shape index: {}]   ;;  %s814_s8 = inlined_call_operand.hbm [shape: f32[16,128], index: 8, kind: output, shape index: {}]  }
   0x1   :  { %14 = vsyncpa [#allocation8], 0 }
   0x2   :  { %15 = vsyncpa [#allocation11], 0 }
   0x3   :  { %16 = vsyncpa [#allocation6], 0  ;;  %s682_s27 = smov [#allocation7]   ;;  %s683_s29 = smov [#allocation10]  }
   0x4   :  { %s37_s28 = sshll.u32 %s682_s27, 4  ;;  %s58_s30 = sshll.u32 %s683_s29, 4  ;;  %s38_s28 = int_to_ptr.vmem [resolvable:$true] %s37_s28  ;;  %s59_s30 = int_to_ptr.vmem [resolvable:$true] %s58_s30 }
   0x5   :  { %s562_s9 = scalar_lea.vmem %s38_s28, 16  ;;  %s566_s10 = scalar_lea.vmem %s38_s28, 32 }
   0x6   :  { %p563_p0 = scmp.ne.s32.totalorder %s38_s28, %s562_s9  ;;  %p567_p1 = scmp.lt.s32.totalorder %s38_s28, %s38_s28 }
   0x7   :  { %p568_p2 = scmp.lt.s32.totalorder %s566_s10, %s562_s9 }
   0x9   :  { %p569_p3 = por %p568_p2, %p567_p1 }
   0xb   :  { %p570_p4 = pnand %p569_p3, %p563_p0 }
   0xd   :  { %573 = shalt.err (!%p570_p4)
}
   0xe   :  { %40 = dma.hbm_to_vmem [thread:$0]  %s808_s2, 16, %s38_s28, [#allocation8]  }
   0xf   :  { %s582_s13 = scalar_lea.vmem %s59_s30, 512  ;;  %p587_p6 = scmp.lt.s32.totalorder %s59_s30, %s59_s30 }
  0x10   :  { %p583_p5 = scmp.ne.s32.totalorder %s59_s30, %s582_s13  ;;  %p588_p7 = scmp.lt.s32.totalorder %s582_s13, %s582_s13 }
  0x12   :  { %p589_p8 = por %p588_p7, %p587_p6 }
  0x14   :  { %p590_p9 = pnand %p589_p8, %p583_p5 }
  0x16   :  { %593 = shalt.err (!%p590_p9)
}
  0x17   :  { %s684_s14 = smov 256   ;;  %s685_s15 = smov 16  }
  0x18   :  { %64 = dma.hbm_to_vmem [thread:$0]  %s810_s4, 512, %s59_s30, [#allocation11], %s684_s14, %s684_s14, %s685_s15  }
  0x19   :  { %s686_s18 = smov [#allocation4]  }
  0x1a   :  { %s22_s19 = sshll.u32 %s686_s18, 4  ;;  %s23_s19 = int_to_ptr.vmem [resolvable:$true] %s22_s19 }
  0x1b   :  { %s602_s20 = scalar_lea.vmem %s23_s19, 256  ;;  %p607_p11 = scmp.lt.s32.totalorder %s23_s19, %s23_s19 }
  0x1c   :  { %p603_p10 = scmp.ne.s32.totalorder %s23_s19, %s602_s20  ;;  %p608_p12 = scmp.lt.s32.totalorder %s602_s20, %s602_s20 }
  0x1e   :  { %p609_p13 = por %p608_p12, %p607_p11 }
  0x20   :  { %p610_p0 = pnand %p609_p13, %p603_p10 }
  0x22   :  { %613 = shalt.err (!%p610_p0)
}
  0x23   :  { %s687_s2 = smov 128   ;;  %s688_s21 = smov 8  }
  0x24   :  { %28 = dma.hbm_to_vmem [thread:$0]  %s806_s0, 256, %s23_s19, [#allocation5], %s687_s2, %s687_s2, %s688_s21  }
  0x25   :  { %s689_s4 = smov [#allocation9]   ;;  %s690_s25 = smov [#allocation12]  }
  0x26   :  { %s46_s24 = sshll.u32 %s689_s4, 4  ;;  %s74_s26 = sshll.u32 %s690_s25, 4  ;;  %s47_s24 = int_to_ptr.vmem [resolvable:$true] %s46_s24  ;;  %s75_s26 = int_to_ptr.vmem [resolvable:$true] %s74_s26 }
  0x27   :  { %s622_s27 = scalar_lea.vmem %s47_s24, 2048  ;;  %p627_p2 = scmp.lt.s32.totalorder %s47_s24, %s47_s24 }
  0x28   :  { %p623_p1 = scmp.ne.s32.totalorder %s47_s24, %s622_s27  ;;  %p628_p3 = scmp.lt.s32.totalorder %s622_s27, %s622_s27 }
  0x2a   :  { %p629_p4 = por %p628_p3, %p627_p2 }
  0x2c   :  { %p630_p5 = pnand %p629_p4, %p623_p1 }
  0x2e   :  { %633 = shalt.err (!%p630_p5)
}
  0x2f   :  { %52 = dma.hbm_to_vmem [thread:$0]  %s809_s3, 2048, %s47_s24, [#allocation8], %s687_s2, %s687_s2, %s688_s21  }
  0x30   :  { %s642_s0 = scalar_lea.vmem %s75_s26, 4096  ;;  %p647_p7 = scmp.lt.s32.totalorder %s75_s26, %s75_s26 }
  0x31   :  { %p643_p6 = scmp.ne.s32.totalorder %s75_s26, %s642_s0  ;;  %p648_p8 = scmp.lt.s32.totalorder %s642_s0, %s642_s0 }
  0x33   :  { %p649_p9 = por %p648_p8, %p647_p7 }
  0x35   :  { %p650_p10 = pnand %p649_p9, %p643_p6 }
  0x37   :  { %653 = shalt.err (!%p650_p10)
}
  0x38   :  { %80 = dma.hbm_to_vmem [thread:$0]  %s813_s7, 4096, %s75_s26, [#allocation11], %s687_s2, %s687_s2, %s688_s21  }
  0x39   :  { %674 = dma.done.wait [#allocation5], 256  }
  0x3a   :  { %675 = vsyncadd [#allocation5], 4294967040 }
  0x3b   :  { %676 = dma.done.wait [#allocation8], 2064  }
  0x3c   :  { %677 = vsyncadd [#allocation8], 4294965232 }
  0x3d   :  { %678 = dma.done.wait [#allocation11], 4608  }
  0x3e   :  { %679 = vsyncadd [#allocation11], 4294962688  ;;  %v145_v0 = vld [vmem:[#allocation10] sm:$0xff]  ;;  %v146_v1 = vld [vmem:[#allocation10 + $0x8] sm:$0xff] }
  0x3f   :  { %v147_v2 = vld [vmem:[#allocation10 + $0x10] sm:$0xff]  ;;  %v151_v3 = vadd.f32 %v146_v1, %v145_v0  ;;  %v148_v4 = vld [vmem:[#allocation10 + $0x18] sm:$0xff]  ;;  %v269_v12 = vld [vmem:[#allocation12 + $0xe8] sm:$0xff] }
  0x40   :  { %v100_v5 = vld [vmem:[#allocation4] sm:$0xff]  ;;  %v154_v6 = vadd.f32 %v148_v4, %v147_v2  ;;  %v101_v7 = vld [vmem:[#allocation4 + $0x8] sm:$0xff]  ;;  %v268_v14 = vld [vmem:[#allocation12 + $0xe0] sm:$0xff] }
  0x41   :  { %104 = vadd.xlane.f32.xlu1 %v100_v5  ;;  %152 = vadd.xlane.f32.xlu0 %v151_v3  ;;  %v271_v8 = vld [vmem:[#allocation12 + $0xf8] sm:$0xff]  ;;  %v270_v10 = vld [vmem:[#allocation12 + $0xf0] sm:$0xff]  ;;  %v253_v13 = vld [vmem:[#allocation12 + $0x68] sm:$0xff] }
  0x42   :  { %v255_v9 = vld [vmem:[#allocation12 + $0x78] sm:$0xff]  ;;  %445 = vmatprep.subr.mxu0 %v271_v8  ;;  %v254_v11 = vld [vmem:[#allocation12 + $0x70] sm:$0xff]  ;;  %v252_v37 = vld [vmem:[#allocation12 + $0x60] sm:$0xff] }
  0x43   :  { %446 = vmatpush3.msra.mxu0 %v255_v9  ;;  %v235_v38 = vld [vmem:[#allocation9 + $0x78] sm:$0xff]  ;;  %v234_v41 = vld [vmem:[#allocation9 + $0x70] sm:$0xff]  ;;  %v233_v44 = vld [vmem:[#allocation9 + $0x68] sm:$0xff] }
  0x44   :  { %447 = vmatprep.subr.mxu0 %v270_v10  ;;  %501 = vmatprep.subr.mxu1 %v235_v38  ;;  %v267_v39 = vld [vmem:[#allocation12 + $0xd8] sm:$0xff]  ;;  %v266_v42 = vld [vmem:[#allocation12 + $0xd0] sm:$0xff]  ;;  %v265_v45 = vld [vmem:[#allocation12 + $0xc8] sm:$0xff] }
  0x45   :  { %106 = vadd.xlane.f32.xlu1 %v101_v7  ;;  %155 = vadd.xlane.f32.xlu0 %v154_v6  ;;  %v251_v40 = vld [vmem:[#allocation12 + $0x58] sm:$0xff]  ;;  %v250_v43 = vld [vmem:[#allocation12 + $0x50] sm:$0xff]  ;;  %v249_v46 = vld [vmem:[#allocation12 + $0x48] sm:$0xff] }
  0x46   :  { %448 = vmatpush3.msra.mxu0 %v254_v11  ;;  %502 = vmatpush3.msra.mxu1 %v235_v38  ;;  %v232_v47 = vld [vmem:[#allocation9 + $0x60] sm:$0xff]  ;;  %v231_v50 = vld [vmem:[#allocation9 + $0x58] sm:$0xff]  ;;  %v230_v53 = vld [vmem:[#allocation9 + $0x50] sm:$0xff] }
  0x47   :  { %449 = vmatprep.subr.mxu0 %v269_v12  ;;  %503 = vmatprep.subr.mxu1 %v234_v41  ;;  %v264_v48 = vld [vmem:[#allocation12 + $0xc0] sm:$0xff]  ;;  %v263_v51 = vld [vmem:[#allocation12 + $0xb8] sm:$0xff]  ;;  %v262_v54 = vld [vmem:[#allocation12 + $0xb0] sm:$0xff] }
  0x48   :  { %450 = vmatpush3.msra.mxu0 %v253_v13  ;;  %504 = vmatpush3.msra.mxu1 %v234_v41  ;;  %v248_v49 = vld [vmem:[#allocation12 + $0x40] sm:$0xff]  ;;  %v247_v52 = vld [vmem:[#allocation12 + $0x38] sm:$0xff]  ;;  %v246_v55 = vld [vmem:[#allocation12 + $0x30] sm:$0xff] }
  0x49   :  { %451 = vmatprep.subr.mxu0 %v268_v14  ;;  %505 = vmatprep.subr.mxu1 %v233_v44  ;;  %v229_v56 = vld [vmem:[#allocation9 + $0x48] sm:$0xff]  ;;  %v228_v59 = vld [vmem:[#allocation9 + $0x40] sm:$0xff]  ;;  %v227_v62 = vld [vmem:[#allocation9 + $0x38] sm:$0xff] }
  0x4a   :  { %452 = vmatpush3.msra.mxu0 %v252_v37  ;;  %506 = vmatpush3.msra.mxu1 %v233_v44  ;;  %v261_v57 = vld [vmem:[#allocation12 + $0xa8] sm:$0xff]  ;;  %v260_v60 = vld [vmem:[#allocation12 + $0xa0] sm:$0xff]  ;;  %v259_v63 = vld [vmem:[#allocation12 + $0x98] sm:$0xff] }
  0x4b   :  { %453 = vmatprep.subr.mxu0 %v267_v39  ;;  %507 = vmatprep.subr.mxu1 %v232_v47  ;;  %v245_v58 = vld [vmem:[#allocation12 + $0x28] sm:$0xff]  ;;  %v244_v61 = vld [vmem:[#allocation12 + $0x20] sm:$0xff]  ;;  %v242_v3 = vld [vmem:[#allocation12 + $0x10] sm:$0xff] }
  0x4c   :  { %454 = vmatpush3.msra.mxu0 %v251_v40  ;;  %508 = vmatpush3.msra.mxu1 %v232_v47  ;;  %v241_v6 = vld [vmem:[#allocation12 + $0x8] sm:$0xff]  ;;  %v256_v8 = vld [vmem:[#allocation12 + $0x80] sm:$0xff]  ;;  %v223_v10 = vld [vmem:[#allocation9 + $0x18] sm:$0xff] }
  0x4d   :  { %455 = vmatprep.subr.mxu0 %v266_v42  ;;  %509 = vmatprep.subr.mxu1 %v231_v50  ;;  %v240_v9 = vld [vmem:[#allocation12] sm:$0xff]  ;;  %v222_v11 = vld [vmem:[#allocation9 + $0x10] sm:$0xff]  ;;  %v221_v12 = vld [vmem:[#allocation9 + $0x8] sm:$0xff] }
  0x4e   :  { %456 = vmatpush3.msra.mxu0 %v250_v43  ;;  %510 = vmatpush3.msra.mxu1 %v231_v50  ;;  %v220_v13 = vld [vmem:[#allocation9] sm:$0xff]  ;;  %v150_v39 = vld [vmem:[%s812_s6] sm:$0x3] }
  0x4f   :  { %457 = vmatprep.subr.mxu0 %v265_v45  ;;  %511 = vmatprep.subr.mxu1 %v230_v53  ;;  %v443_v45 = vld [vmem:[%s807_s1] ss:$0 sm:$0xff]  ;;  %s691_s1 = smov [#allocation13]  }
  0x50   :  { %458 = vmatpush3.msra.mxu0 %v249_v46  ;;  %512 = vmatpush3.msra.mxu1 %v230_v53 }
  0x51   :  { %459 = vmatprep.subr.mxu0 %v264_v48  ;;  %513 = vmatprep.subr.mxu1 %v229_v56 }
  0x52   :  { %460 = vmatpush3.msra.mxu0 %v248_v49  ;;  %514 = vmatpush3.msra.mxu1 %v229_v56 }
  0x53   :  { %461 = vmatprep.subr.mxu0 %v263_v51  ;;  %515 = vmatprep.subr.mxu1 %v228_v59 }
  0x54   :  { %462 = vmatpush3.msra.mxu0 %v247_v52  ;;  %516 = vmatpush3.msra.mxu1 %v228_v59 }
  0x55   :  { %463 = vmatprep.subr.mxu0 %v262_v54  ;;  %517 = vmatprep.subr.mxu1 %v227_v62  ;;  %v444_v54 = vld [vmem:[#allocation7] ss:$0 sm:$0xff] }
  0x56   :  { %464 = vmatpush3.msra.mxu0 %v246_v55  ;;  %518 = vmatpush3.msra.mxu1 %v227_v62 }
  0x57   :  { %465 = vmatprep.subr.mxu0 %v261_v57 }
  0x58   :  { %466 = vmatpush3.msra.mxu0 %v245_v58 }
  0x59   :  { %467 = vmatprep.subr.mxu0 %v260_v60 }
  0x5a   :  { %468 = vmatpush3.msra.mxu0 %v244_v61 }
  0x5b   :  { %469 = vmatprep.subr.mxu0 %v259_v63 }
  0xca   :  { %v105_v15 = vpop.xlane.xlu1 %104  ;;  %v153_v16 = vpop.xlane.xlu0 %152 }
  0xcb   :  { %v109_v17 = vmul.f32 0.0078125, %v105_v15  ;;  %v158_v18 = vmul.f32 0.00390625, %v153_v16 }
  0xcd   :  { %v761_v19 = vsub.f32 %v145_v0, %v158_v18  ;;  %v763_v20 = vsub.f32 %v146_v1, %v158_v18  ;;  %v765_v23 = vsub.f32 %v100_v5, %v109_v17  ;;  %v243_v0 = vld [vmem:[#allocation12 + $0x18] sm:$0xff]  ;;  %v226_v1 = vld [vmem:[#allocation9 + $0x30] sm:$0xff]  ;;  %v257_v5 = vld [vmem:[#allocation12 + $0x88] sm:$0xff]  ;;  %v181_v17 = vlaneseq }
  0xce   :  { %v107_v21 = vpop.xlane.xlu1 %106  ;;  %v156_v22 = vpop.xlane.xlu0 %155  ;;  %470 = vmatpush3.msra.mxu0 %v243_v0  ;;  %519 = vmatprep.subr.mxu1 %v226_v1 }
  0xcf   :  { %v159_v24 = vmul.f32 0.00390625, %v156_v22  ;;  %v164_v25 = vmul.f32 %v761_v19, %v761_v19  ;;  %v165_v26 = vmul.f32 %v763_v20, %v763_v20  ;;  %v110_v27 = vmul.f32 0.0078125, %v107_v21  ;;  %520 = vmatpush3.msra.mxu1 %v226_v1 }
  0xd0   :  { %v113_v34 = vmul.f32 %v765_v23, %v765_v23 }
  0xd1   :  { %v771_v28 = vsub.f32 %v147_v2, %v159_v24  ;;  %v773_v29 = vsub.f32 %v148_v4, %v159_v24  ;;  %v168_v30 = vadd.f32 %v165_v26, %v164_v25  ;;  %v775_v31 = vsub.f32 %v101_v7, %v110_v27  ;;  %v258_v2 = vld [vmem:[#allocation12 + $0x90] sm:$0xff]  ;;  %v225_v4 = vld [vmem:[#allocation9 + $0x28] sm:$0xff]  ;;  %v224_v7 = vld [vmem:[#allocation9 + $0x20] sm:$0xff] }
  0xd2   :  { %471 = vmatprep.subr.mxu0 %v258_v2  ;;  %521 = vmatprep.subr.mxu1 %v225_v4  ;;  %v182_v27 = vshrl.u32 %v181_v17, 7 }
  0xd3   :  { %169 = vadd.xlane.f32.xlu0 %v168_v30  ;;  %v166_v32 = vmul.f32 %v771_v28, %v771_v28  ;;  %v167_v33 = vmul.f32 %v773_v29, %v773_v29  ;;  %v114_v36 = vmul.f32 %v775_v31, %v775_v31  ;;  %472 = vmatpush3.msra.mxu0 %v242_v3 }
  0xd4   :  { %473 = vmatprep.subr.mxu0 %v257_v5  ;;  %522 = vmatpush3.msra.mxu1 %v225_v4 }
  0xd5   :  { %v171_v35 = vadd.f32 %v167_v33, %v166_v32  ;;  %474 = vmatpush3.msra.mxu0 %v241_v6  ;;  %523 = vmatprep.subr.mxu1 %v224_v7 }
  0xd6   :  { %475 = vmatprep.subr.mxu0 %v256_v8  ;;  %524 = vmatpush3.msra.mxu1 %v224_v7 }
  0xd7   :  { %172 = vadd.xlane.f32.xlu1 %v171_v35  ;;  %115 = vadd.xlane.f32.xlu0 %v113_v34  ;;  %v183_v34 = vsub.s32 0, %v182_v27  ;;  %v187_v35 = vsub.s32 1, %v182_v27 }
  0xd8   :  { %476 = vmatpush3.msra.mxu0 %v240_v9  ;;  %525 = vmatprep.subr.mxu1 %v223_v10 }
  0xd9   :  { %526 = vmatpush3.msra.mxu1 %v223_v10  ;;  %v203_v42 = vrot.slane %v150_v39, %v183_v34  ;;  %v207_v43 = vrot.slane %v150_v39, %v187_v35 }
  0xda   :  { %527 = vmatprep.subr.mxu1 %v222_v11 }
  0xdb   :  { %117 = vadd.xlane.f32.xlu1 %v114_v36  ;;  %528 = vmatpush3.msra.mxu1 %v222_v11  ;;  %v149_v36 = vld [vmem:[%s811_s5] sm:$0x3]  ;;  %s429_s5 = sshll.u32 %s691_s1, 4  ;;  %s430_s5 = int_to_ptr.vmem [resolvable:$true] %s429_s5 }
  0xdc   :  { %529 = vmatprep.subr.mxu1 %v221_v12  ;;  %v184_v37 = vrot.slane %v149_v36, %v183_v34  ;;  %v188_v38 = vrot.slane %v149_v36, %v187_v35  ;;  %s654_s6 = scalar_lea.vmem %s430_s5, 256  ;;  %p659_p12 = scmp.lt.s32.totalorder %s430_s5, %s430_s5 }
  0xdd   :  { %530 = vmatpush3.msra.mxu1 %v221_v12  ;;  %p655_p11 = scmp.ne.s32.totalorder %s430_s5, %s654_s6  ;;  %p660_p13 = scmp.lt.s32.totalorder %s654_s6, %s654_s6 }
  0xde   :  { %531 = vmatprep.subr.mxu1 %v220_v13 }
  0xdf   :  { %532 = vmatpush3.msra.mxu1 %v220_v13  ;;  %p661_p0 = por %p660_p13, %p659_p12 }
  0xe1   :  { %p662_p1 = pnand %p661_p0, %p655_p11 }
 0x15c   :  { %v170_v14 = vpop.xlane.xlu0 %169 }
 0x15d   :  { %v174_v15 = vmul.f32 0.00390625, %v170_v14 }
 0x15f   :  { %v176_v16 = vadd.f32 1e-05, %v174_v15 }
 0x160   :  { %v116_v18 = vpop.xlane.xlu0 %115  ;;  %v173_v21 = vpop.xlane.xlu1 %172 }
 0x161   :  { %546 = vrsqrt.f32 %v176_v16  ;;  %v119_v22 = vmul.f32 0.0078125, %v116_v18  ;;  %v175_v24 = vmul.f32 0.00390625, %v173_v21 }
 0x163   :  { %v121_v25 = vadd.f32 1e-05, %v119_v22  ;;  %v177_v26 = vadd.f32 1e-05, %v175_v24 }
 0x164   :  { %v118_v30 = vpop.xlane.xlu1 %117 }
 0x165   :  { %548 = vrsqrt.f32 %v121_v25  ;;  %v120_v32 = vmul.f32 0.0078125, %v118_v30 }
 0x166   :  { %550 = vrsqrt.f32 %v177_v26 }
 0x167   :  { %v122_v33 = vadd.f32 1e-05, %v120_v32 }
 0x169   :  { %552 = vrsqrt.f32 %v122_v33 }
 0x16e   :  { %v547_v40 = vpop.eup %546 }
 0x16f   :  { %v192_v41 = vmul.f32 %v547_v40, %v188_v38  ;;  %v191_v44 = vmul.f32 %v547_v40, %v184_v37 }
 0x171   :  { %v196_v46 = vmul.f32 %v192_v41, %v763_v20  ;;  %v195_v47 = vmul.f32 %v191_v44, %v761_v19 }
 0x172   :  { %v549_v48 = vpop.eup %548 }
 0x173   :  { %v551_v49 = vpop.eup %550  ;;  %v211_v50 = vadd.f32 %v207_v43, %v196_v46  ;;  %v210_v51 = vadd.f32 %v203_v42, %v195_v47  ;;  %v131_v52 = vmul.f32 %v549_v48, %v443_v45 }
 0x174   :  { %v194_v53 = vmul.f32 %v551_v49, %v188_v38  ;;  %v193_v55 = vmul.f32 %v551_v49, %v184_v37 }
 0x175   :  { %336 = vmatprep.mubr.f32.mxu0 %v211_v50  ;;  %v133_v56 = vmul.f32 %v131_v52, %v765_v23 }
 0x176   :  { %v553_v57 = vpop.eup %552  ;;  %337 = vmatmul.mubr.f32.vlgmr.msra.gmra.mxu0 %v210_v51  ;;  %v198_v58 = vmul.f32 %v194_v53, %v773_v29  ;;  %v197_v59 = vmul.f32 %v193_v55, %v771_v28 }
 0x177   :  { %v132_v20 = vmul.f32 %v553_v57, %v443_v45  ;;  %v141_v60 = vadd.f32 %v444_v54, %v133_v56 }
 0x178   :  { %v213_v19 = vadd.f32 %v207_v43, %v198_v58  ;;  %v212_v61 = vadd.f32 %v203_v42, %v197_v59 }
 0x179   :  { %v134_v62 = vmul.f32 %v132_v20, %v775_v31  ;;  %533 = vmatprep.mubr.f32.mxu1 %v141_v60 }
 0x17a   :  { %341 = vmatprep.mubr.f32.mxu0 %v213_v19 }
 0x17b   :  { %v142_v63 = vadd.f32 %v444_v54, %v134_v62  ;;  %342 = vmatmul.mubr.f32.gmra.mxu0 %v212_v61 }
 0x17d   :  { %534 = vmatmul.mubr.f32.vlgmr.msra.gmra.mxu1 %v142_v63 }
 0x236   :  { %v477_v0 = vpop.f32.mrf.mxu0 }
 0x238   :  { %v478_v1 = vpop.f32.mrf.mxu0 }
 0x239   :  { %v479_v29 = vadd.f32 %v478_v1, %v477_v0 }
 0x23b   :  { %v480_v23 = vpop.f32.mrf.mxu0 }
 0x23d   :  { %v481_v2 = vpop.f32.mrf.mxu0  ;;  %v535_v3 = vpop.f32.mrf.mxu1 }
 0x23e   :  { %v482_v28 = vadd.f32 %v481_v2, %v480_v23 }
 0x23f   :  { %v413_v4 = vpop.f32.mrf.mxu1 }
 0x240   :  { %v419_v5 = vadd.f32 %v535_v3, %v482_v28  ;;  %v414_v6 = vadd.f32 %v479_v29, %v413_v4 }
 0x242   :  { %423 = vst [vmem:[#allocation13 + $0x8] sm:$0xff] %v419_v5  ;;  %422 = vst [vmem:[#allocation13] sm:$0xff] %v414_v6 }
 0x243   :  { %665 = shalt.err (!%p662_p1)
}
 0x244   :  { %435 = dma.vmem_to_hbm [thread:$0]  %s430_s5, 256, %s814_s8, [#allocation6], %s687_s2, %s687_s2, %s688_s21  }
 0x245   :  { %680 = dma.done.wait [#allocation6], 256  }
 0x246   :  { %681 = vsyncadd [#allocation6], 4294967040 }
 0x247   :  { %439 = vsyncpa [#allocation5], 1 }
 0x248   :  { %440 = vsyncpa [#allocation8], 1 }
 0x249   :  { %441 = vsyncpa [#allocation11], 1 }
 0x24a   :  { %442 = vsyncpa [#allocation6], 1 }

</bundles_post_ra>
